<compile_context>
chip_gen: v5e
topology: v5e:2x2
jax: 0.10.0
libtpu: 0.0.40
codegen_flags: <defaults>
</compile_context>

<pallas_src>
import functools

import jax
import jax.numpy as jnp
from jax import lax
from jax.experimental import pallas as pl
from jax.experimental.pallas import tpu as pltpu


# ------------------------------- kernel ------------------------------------ #
def focal_loss_kernel(logits_ref, tgt_ref, loss_ref, cnt_ref, *,
                      alpha, gamma, ignore_index, n_rows, tile_n,
                      tiles_per_split):
    split = pl.program_id(0)     # "parallel" axis (v7x: one per TensorCore)
    i = pl.program_id(1)         # "arbitrary" reduction axis over row tiles

    @pl.when(i == 0)
    def _init():
        loss_ref[...] = jnp.zeros_like(loss_ref)
        cnt_ref[...] = jnp.zeros_like(cnt_ref)

    x = logits_ref[...].astype(jnp.float32)          # (TN, C), cast in VMEM
    tgt = tgt_ref[...]                               # (TN, 1)  int32

    # Logical global row index of every row in this tile. Tail rows of a partial
    # last block and duplicated (index-clamped) blocks get row >= n_rows and are
    # masked out, so their (undefined) contents never contribute.
    blk = split * tiles_per_split + i
    row = blk * tile_n + lax.broadcasted_iota(jnp.int32, tgt.shape, 0)
    valid = jnp.logical_and(row < n_rows, tgt != ignore_index)   # (TN, 1) bool

    # Fused single pass: max -> shifted -> {exp-sum, picked logit} from the same
    # shifted vregs;  ce = logsumexp(x) - x[t] = log(sum_exp) - (x[t] - max).
    col = lax.broadcasted_iota(jnp.int32, x.shape, 1)
    m = jnp.max(x, axis=-1, keepdims=True)
    shifted = x - m
    sum_exp = jnp.sum(jnp.exp(shifted), axis=-1, keepdims=True)
    picked_shifted = jnp.sum(jnp.where(col == tgt, shifted, 0.0),
                             axis=-1, keepdims=True)
    ce = jnp.log(sum_exp) - picked_shifted           # (TN, 1), >= 0
    pt = jnp.exp(-ce)
    om = jnp.maximum(1.0 - pt, 0.0)                  # guard tiny rounding
    if gamma == 2.0:
        focal = om * om
    elif gamma == 1.0:
        focal = om
    elif gamma == 0.0:
        focal = jnp.ones_like(om)
    else:
        focal = om ** gamma

    fl = jnp.where(valid, alpha * focal * ce, 0.0)   # where(): NaN-safe masking
    vcnt = jnp.where(valid, 1.0, 0.0)

    # Scalar accumulation into the resident (1,1) output blocks.
    loss_ref[...] += jnp.sum(fl, keepdims=True)      # (1, 1)
    cnt_ref[...] += jnp.sum(vcnt, keepdims=True)     # (1, 1)


# ------------------------------- wrapper ----------------------------------- #
def focal_loss(inputs, targets, *, alpha=1.0, gamma=2.0, reduction="mean",
               ignore_index=-1, max_rows_per_block=8192):
    if reduction not in ("mean", "sum"):
        # TODO(synk): reduction='none' returns a dynamically-sized
        # (ignore-filtered) vector; no static-shape Pallas equivalent.
        raise ValueError("focal_loss: only 'mean' and 'sum' reductions supported")

    c = inputs.shape[-1]
    x = inputs.reshape(-1, c)                        # native dtype, cast in-kernel
    t = targets.reshape(-1, 1).astype(jnp.int32)
    n = x.shape[0]

    # Row tile: lane dim is the true C (== full array dim -> no class padding,
    # no HBM pad round trip). Rows per block target ~8 MiB of logits per
    # pipeline buffer (multiple of 8), capped so double-buffering stays well
    # inside the smallest (v7x, 64 MiB) VMEM.
    itemsize = jnp.dtype(x.dtype).itemsize
    tile_n = (8 * 1024 * 1024) // max(1, c * itemsize)
    tile_n = max(8, min(int(max_rows_per_block), (tile_n // 8) * 8))
    if n <= tile_n:
        tile_n = n                                   # single full-extent block
    total_tiles = pl.cdiv(n, tile_n)

    # v7x has 2 TensorCores: a leading "parallel" axis gives each core its own
    # half of the row tiles and its own (1,1) partial accumulators. On v5e/v6e
    # (1 TC) this axis is simply serialized.
    num_splits = 2 if total_tiles >= 2 else 1
    tiles_per_split = pl.cdiv(total_tiles, num_splits)
    last_block = total_tiles - 1

    def in_map(s, i):
        # Clamp so padded grid steps never index past the array; those steps are
        # fully masked in-kernel via the logical row index.
        return (jnp.minimum(s * tiles_per_split + i, last_block), 0)

    kernel = functools.partial(
        focal_loss_kernel,
        alpha=float(alpha), gamma=float(gamma), ignore_index=int(ignore_index),
        n_rows=n, tile_n=tile_n, tiles_per_split=tiles_per_split)

    tile_bytes = tile_n * c * itemsize
    vmem_limit = int(min(48 * 1024 * 1024, max(32 * 1024 * 1024, 4 * tile_bytes)))

    loss_p, cnt_p = pl.pallas_call(
        kernel,
        out_shape=(jax.ShapeDtypeStruct((num_splits, 1), jnp.float32),
                   jax.ShapeDtypeStruct((num_splits, 1), jnp.float32)),
        grid_spec=pltpu.PrefetchScalarGridSpec(
            num_scalar_prefetch=0,
            grid=(num_splits, tiles_per_split),
            in_specs=[
                pl.BlockSpec((tile_n, c), in_map),
                pl.BlockSpec((tile_n, 1), in_map),
            ],
            out_specs=[
                pl.BlockSpec((1, 1), lambda s, i: (s, 0)),
                pl.BlockSpec((1, 1), lambda s, i: (s, 0)),
            ],
        ),
        compiler_params=pltpu.CompilerParams(
            dimension_semantics=("parallel", "arbitrary"),
            vmem_limit_bytes=vmem_limit),
    )(x, t)

    total = jnp.sum(loss_p)
    if reduction == "mean":
        # NOTE: if every target == ignore_index this is 0/0 -> NaN, matching
        # torch F.cross_entropy(reduction='mean') on an empty selection.
        return total / jnp.sum(cnt_p)
    return total


# --------------------------- pure-JAX reference ----------------------------- #
def focal_loss_ref(inputs, targets, *, alpha=1.0, gamma=2.0,
                   reduction="mean", ignore_index=-1):
    c = inputs.shape[-1]
    x = inputs.reshape(-1, c).astype(jnp.float32)
    t = targets.reshape(-1).astype(jnp.int32)
    valid = t != ignore_index
    t_safe = jnp.where(valid, t, 0)
    logp = jax.nn.log_softmax(x, axis=-1)
    ce = -jnp.take_along_axis(logp, t_safe[:, None], axis=-1)[:, 0]
    pt = jnp.exp(-ce)
    fl = alpha * (1.0 - pt) ** gamma * ce
    fl = jnp.where(valid, fl, 0.0)
    if reduction == "mean":
        return jnp.sum(fl) / jnp.sum(valid.astype(jnp.float32))
    return jnp.sum(fl)


# --------------------------------- demo ------------------------------------- #
if __name__ == "__main__":
    key = jax.random.PRNGKey(0)
    k1, k2, k3, k4 = jax.random.split(key, 4)

    # --- small case: batch=4, seq=8, 10 classes (single-tile path) ----------
    B, T, C = 4, 8, 10
    logits = jax.random.normal(k1, (B, T, C), dtype=jnp.float32)
    targets = jax.random.randint(k2, (B, T), 0, C, dtype=jnp.int32)
    targets = targets.at[0, 0].set(-1).at[2, 5].set(-1).at[3, 7].set(-1)

    loss = jax.block_until_ready(focal_loss(logits, targets))       # mean
    ref = focal_loss_ref(logits, targets)
    assert loss.shape == ()
    assert jnp.allclose(loss, ref, rtol=1e-5, atol=1e-6), (loss, ref)

    loss_sum = jax.block_until_ready(focal_loss(logits, targets, reduction="sum"))
    ref_sum = focal_loss_ref(logits, targets, reduction="sum")
    assert jnp.allclose(loss_sum, ref_sum, rtol=1e-5, atol=1e-5), (loss_sum, ref_sum)

    # --- multi-tile / dual-split / partial-tail path, bf16 inputs -----------
    # 40 rows with 16-row tiles -> 3 tiles over 2 splits, last tile partial.
    B2, T2, C2 = 5, 8, 10
    logits2 = jax.random.normal(k3, (B2, T2, C2), dtype=jnp.float32).astype(jnp.bfloat16)
    targets2 = jax.random.randint(k4, (B2, T2), 0, C2, dtype=jnp.int32)
    targets2 = targets2.at[1, 3].set(-1).at[4, 7].set(-1)

    loss2 = jax.block_until_ready(
        focal_loss(logits2, targets2, max_rows_per_block=16))
    ref2 = focal_loss_ref(logits2, targets2)
    assert jnp.allclose(loss2, ref2, rtol=1e-4, atol=1e-4), (loss2, ref2)

    print("KERNEL_OK")
</pallas_src>

<mosaic_0001>
module attributes {stable_mosaic.version = 11 : i64} {
  func.func @focal_loss_kernel(%arg0: i32, %arg1: i32, %arg2: memref<32x10xf32, #tpu.memory_space<vmem>>, %arg3: memref<32x1xi32, #tpu.memory_space<vmem>>, %arg4: memref<1x1xf32, #tpu.memory_space<vmem>>, %arg5: memref<1x1xf32, #tpu.memory_space<vmem>>) attributes {dimension_semantics = [#tpu.dimension_semantics<parallel>, #tpu.dimension_semantics<arbitrary>], iteration_bounds = array<i64: 1, 1>, scalar_prefetch = 0 : i64, scratch_operands = 0 : i64, tpu.core_type = #tpu.core_type<tc>, window_params = [{transform_indices = @transform_0, window_bounds = array<i64: 32, 10>}, {transform_indices = @transform_1, window_bounds = array<i64: 32, 1>}, {transform_indices = @transform_2, window_bounds = array<i64: 1, 1>}, {transform_indices = @transform_3, window_bounds = array<i64: 1, 1>}]} {
    %c0_i32 = arith.constant 0 : i32
    %0 = arith.cmpi eq, %arg1, %c0_i32 : i32
    %1 = arith.extui %0 : i1 to i32
    %c0_i32_0 = arith.constant 0 : i32
    %2 = arith.cmpi ne, %1, %c0_i32_0 : i32
    scf.if %2 {
      %cst_25 = arith.constant 0.000000e+00 : f32
      %64 = vector.broadcast %cst_25 : f32 to vector<1x1xf32>
      %c0_26 = arith.constant 0 : index
      %c0_27 = arith.constant 0 : index
      %65 = vector.load %arg4[%c0_26, %c0_27] : memref<1x1xf32, #tpu.memory_space<vmem>>, vector<1x1xf32>
      tpu.vector_store %arg4[%c0_26, %c0_27], %64 {strides = array<i32>} : memref<1x1xf32, #tpu.memory_space<vmem>>, vector<1x1xf32>,
      %cst_28 = arith.constant 0.000000e+00 : f32
      %66 = vector.broadcast %cst_28 : f32 to vector<1x1xf32>
      %c0_29 = arith.constant 0 : index
      %c0_30 = arith.constant 0 : index
      %67 = vector.load %arg5[%c0_29, %c0_30] : memref<1x1xf32, #tpu.memory_space<vmem>>, vector<1x1xf32>
      tpu.vector_store %arg5[%c0_29, %c0_30], %66 {strides = array<i32>} : memref<1x1xf32, #tpu.memory_space<vmem>>, vector<1x1xf32>,
    } else {
    }
    %c0 = arith.constant 0 : index
    %c0_1 = arith.constant 0 : index
    %3 = vector.load %arg2[%c0, %c0_1] : memref<32x10xf32, #tpu.memory_space<vmem>>, vector<32x10xf32>
    %c0_2 = arith.constant 0 : index
    %c0_3 = arith.constant 0 : index
    %4 = vector.load %arg3[%c0_2, %c0_3] : memref<32x1xi32, #tpu.memory_space<vmem>>, vector<32x1xi32>
    %c1_i32 = arith.constant 1 : i32
    %5 = arith.muli %arg0, %c1_i32 : i32
    %6 = arith.addi %5, %arg1 : i32
    %c32_i32 = arith.constant 32 : i32
    %7 = arith.muli %6, %c32_i32 : i32
    %8 = tpu.iota {dimensions = array<i32: 0>} : vector<32x1xi32>
    %9 = vector.broadcast %7 : i32 to vector<32x1xi32>
    %10 = arith.addi %9, %8 : vector<32x1xi32>
    %c32_i32_4 = arith.constant 32 : i32
    %11 = vector.broadcast %c32_i32_4 : i32 to vector<32x1xi32>
    %12 = arith.cmpi slt, %10, %11 : vector<32x1xi32>
    %c-1_i32 = arith.constant -1 : i32
    %13 = vector.broadcast %c-1_i32 : i32 to vector<32x1xi32>
    %14 = arith.cmpi ne, %4, %13 : vector<32x1xi32>
    %15 = arith.andi %12, %14 : vector<32x1xi1>
    %16 = tpu.iota {dimensions = array<i32: 1>} : vector<32x10xi32>
    %cst = arith.constant dense<0xFF800000> : vector<32xf32>
    %17 = vector.multi_reduction <maximumf>, %3, %cst [1] : vector<32x10xf32> to vector<32xf32>
    %18 = vector.shape_cast %17 : vector<32xf32> to vector<32x1xf32>
    %19 = vector.broadcast %18 : vector<32x1xf32> to vector<32x10xf32>
    %20 = arith.subf %3, %19 : vector<32x10xf32>
    %21 = math.exp %20 : vector<32x10xf32>
    %cst_5 = arith.constant dense<0.000000e+00> : vector<32xf32>
    %22 = vector.multi_reduction <add>, %21, %cst_5 [1] : vector<32x10xf32> to vector<32xf32>
    %23 = vector.shape_cast %22 : vector<32xf32> to vector<32x1xf32>
    %24 = vector.broadcast %4 : vector<32x1xi32> to vector<32x10xi32>
    %25 = arith.cmpi eq, %16, %24 : vector<32x10xi32>
    %cst_6 = arith.constant 0.000000e+00 : f32
    %26 = vector.broadcast %cst_6 : f32 to vector<32x10xf32>
    %27 = arith.select %25, %20, %26 : vector<32x10xi1>, vector<32x10xf32>
    %cst_7 = arith.constant dense<0.000000e+00> : vector<32xf32>
    %28 = vector.multi_reduction <add>, %27, %cst_7 [1] : vector<32x10xf32> to vector<32xf32>
    %29 = vector.shape_cast %28 : vector<32xf32> to vector<32x1xf32>
    %30 = math.log %23 : vector<32x1xf32>
    %31 = arith.subf %30, %29 : vector<32x1xf32>
    %cst_8 = arith.constant 0.000000e+00 : f32
    %32 = vector.broadcast %cst_8 : f32 to vector<32x1xf32>
    %33 = arith.subf %32, %31 : vector<32x1xf32>
    %34 = math.exp %33 : vector<32x1xf32>
    %cst_9 = arith.constant 1.000000e+00 : f32
    %35 = vector.broadcast %cst_9 : f32 to vector<32x1xf32>
    %36 = arith.subf %35, %34 : vector<32x1xf32>
    %cst_10 = arith.constant 0.000000e+00 : f32
    %37 = vector.broadcast %cst_10 : f32 to vector<32x1xf32>
    %38 = arith.maximumf %36, %37 : vector<32x1xf32>
    %39 = arith.mulf %38, %38 : vector<32x1xf32>
    %cst_11 = arith.constant 1.000000e+00 : f32
    %40 = vector.broadcast %cst_11 : f32 to vector<32x1xf32>
    %41 = arith.mulf %40, %39 : vector<32x1xf32>
    %42 = arith.mulf %41, %31 : vector<32x1xf32>
    %cst_12 = arith.constant 0.000000e+00 : f32
    %43 = vector.broadcast %cst_12 : f32 to vector<32x1xf32>
    %44 = arith.select %15, %42, %43 : vector<32x1xi1>, vector<32x1xf32>
    %cst_13 = arith.constant 1.000000e+00 : f32
    %cst_14 = arith.constant 0.000000e+00 : f32
    %45 = vector.broadcast %cst_13 : f32 to vector<32x1xf32>
    %46 = vector.broadcast %cst_14 : f32 to vector<32x1xf32>
    %47 = arith.select %15, %45, %46 : vector<32x1xi1>, vector<32x1xf32>
    %c0_15 = arith.constant 0 : index
    %c0_16 = arith.constant 0 : index
    %48 = vector.load %arg4[%c0_15, %c0_16] : memref<1x1xf32, #tpu.memory_space<vmem>>, vector<1x1xf32>
    %49 = vector.shape_cast %44 : vector<32x1xf32> to vector<1x32x1xf32>
    %cst_17 = arith.constant dense<0.000000e+00> : vector<1xf32>
    %50 = vector.multi_reduction <add>, %49, %cst_17 [1, 2] : vector<1x32x1xf32> to vector<1xf32>
    %51 = vector.shape_cast %50 : vector<1xf32> to vector<1x1x1xf32>
    %52 = vector.extract %51[0, 0, 0] : f32 from vector<1x1x1xf32>
    %53 = vector.broadcast %52 : f32 to vector<1x1xf32>
    %54 = arith.addf %48, %53 : vector<1x1xf32>
    %c0_18 = arith.constant 0 : index
    %c0_19 = arith.constant 0 : index
    %55 = vector.load %arg4[%c0_18, %c0_19] : memref<1x1xf32, #tpu.memory_space<vmem>>, vector<1x1xf32>
    tpu.vector_store %arg4[%c0_18, %c0_19], %54 {strides = array<i32>} : memref<1x1xf32, #tpu.memory_space<vmem>>, vector<1x1xf32>,
    %c0_20 = arith.constant 0 : index
    %c0_21 = arith.constant 0 : index
    %56 = vector.load %arg5[%c0_20, %c0_21] : memref<1x1xf32, #tpu.memory_space<vmem>>, vector<1x1xf32>
    %57 = vector.shape_cast %47 : vector<32x1xf32> to vector<1x32x1xf32>
    %cst_22 = arith.constant dense<0.000000e+00> : vector<1xf32>
    %58 = vector.multi_reduction <add>, %57, %cst_22 [1, 2] : vector<1x32x1xf32> to vector<1xf32>
    %59 = vector.shape_cast %58 : vector<1xf32> to vector<1x1x1xf32>
    %60 = vector.extract %59[0, 0, 0] : f32 from vector<1x1x1xf32>
    %61 = vector.broadcast %60 : f32 to vector<1x1xf32>
    %62 = arith.addf %56, %61 : vector<1x1xf32>
    %c0_23 = arith.constant 0 : index
    %c0_24 = arith.constant 0 : index
    %63 = vector.load %arg5[%c0_23, %c0_24] : memref<1x1xf32, #tpu.memory_space<vmem>>, vector<1x1xf32>
    tpu.vector_store %arg5[%c0_23, %c0_24], %62 {strides = array<i32>} : memref<1x1xf32, #tpu.memory_space<vmem>>, vector<1x1xf32>,
    return
  }
  func.func @transform_0(%arg0: i32, %arg1: i32) -> (i32, i32) {
    %c1_i32 = arith.constant 1 : i32
    %0 = arith.muli %arg0, %c1_i32 : i32
    %1 = arith.addi %0, %arg1 : i32
    %c0_i32 = arith.constant 0 : i32
    %2 = arith.minsi %1, %c0_i32 : i32
    %c0_i32_0 = arith.constant 0 : i32
    %c0_i32_1 = arith.constant 0 : i32
    return %2, %c0_i32_0 : i32, i32
  }
  func.func @transform_1(%arg0: i32, %arg1: i32) -> (i32, i32) {
    %c1_i32 = arith.constant 1 : i32
    %0 = arith.muli %arg0, %c1_i32 : i32
    %1 = arith.addi %0, %arg1 : i32
    %c0_i32 = arith.constant 0 : i32
    %2 = arith.minsi %1, %c0_i32 : i32
    %c0_i32_0 = arith.constant 0 : i32
    %c0_i32_1 = arith.constant 0 : i32
    return %2, %c0_i32_0 : i32, i32
  }
  func.func @transform_2(%arg0: i32, %arg1: i32) -> (i32, i32) {
    %c0_i32 = arith.constant 0 : i32
    %c0_i32_0 = arith.constant 0 : i32
    return %arg0, %c0_i32 : i32, i32
  }
  func.func @transform_3(%arg0: i32, %arg1: i32) -> (i32, i32) {
    %c0_i32 = arith.constant 0 : i32
    %c0_i32_0 = arith.constant 0 : i32
    return %arg0, %c0_i32 : i32, i32
  }
}

</mosaic_0001>

<bundles_post_ra>
// kernel: tpu_custom_call.1
= control target key start
LH: loop header
LB: loop body
LE: loop exit
PB: predicated region body
PF: predicated region fallthrough
CT: control target
= control target key end

     0   :  { %9 = vsyncpa [#allocation3], 0  ;;  %vm120_vm0 = vcmask 80896   ;;  %v410_v4 = vmov 0   ;;  %s526_s0 = inlined_call_operand.vmem [shape: f32[32,10], index: 0, kind: input, shape index: {}]   ;;  %s527_s1 = inlined_call_operand.vmem [shape: s32[32,1], index: 1, kind: input, shape index: {}]   ;;  %s528_s2 = inlined_call_operand.hbm [shape: f32[1,1], index: 2, kind: output, shape index: {0}]   ;;  %s529_s3 = inlined_call_operand.hbm [shape: f32[1,1], index: 3, kind: output, shape index: {1}]  }
   0x1   :  { %v88_v0 = vld [vmem:[%s526_s0 + $0x10] sm:$0xff]  ;;  %v86_v1 = vld [vmem:[%s526_s0] sm:$0xff]  ;;  %331 = vset.pattern.permute.xlu2 %v410_v4  ;;  %332 = vset.pattern.permute.xlu0 %v410_v4 }
   0x2   :  { %v127_v2 = vsel %vm120_vm0, %v88_v0, -inf  ;;  %v121_v3 = vsel %vm120_vm0, %v86_v1, -inf  ;;  %v445_v5 = vld [vmem:[%s527_s1] sm:$0xff] }
   0x3   :  { %128 = vmax.xlane.f32.xlu1 %v127_v2  ;;  %122 = vmax.xlane.f32.xlu0 %v121_v3 }
   0x4   :  { %10 = vsyncpa [#allocation5], 0  ;;  %158 = vperm.xlu2 %331, %v445_v5   ;;  %333 = vset.pattern.permute.xlu1 %v410_v4  ;;  %v89_v6 = vld [vmem:[%s526_s0 + $0x18] sm:$0xff]  ;;  %v87_v7 = vld [vmem:[%s526_s0 + $0x8] sm:$0xff]  ;;  %v118_v19 = vlaneseq  ;;  %vm110_vm5 = vcmp.ne.s32.totalorder %v445_v5, 4294967295  ;;  %v411_v52 = vmov 0.0  }
   0x5   :  { %v130_v8 = vsel %vm120_vm0, %v89_v6, -inf  ;;  %v124_v9 = vsel %vm120_vm0, %v87_v7, -inf  ;;  %v459_v10 = vld [vmem:[%s527_s1 + $0x8] sm:$0xff]  ;;  %v465_v11 = vld [vmem:[%s527_s1 + $0x10] sm:$0xff]  ;;  %v471_v12 = vld [vmem:[%s527_s1 + $0x18] sm:$0xff]  ;;  %v233_v53 = vsel %vm110_vm5, 1.0, %v411_v52 }
   0x6   :  { %v119_v22 = vand.u32 127, %v118_v19  ;;  %vm111_vm6 = vcmp.ne.s32.totalorder %v459_v10, 4294967295  ;;  %vm112_vm7 = vcmp.ne.s32.totalorder %v465_v11, 4294967295  ;;  %vm238_vm8 = vcmask 7168   ;;  %s412_s1 = smov [#allocation2]   ;;  %s286_s30 = sshll.u32 %s528_s2, 4  ;;  %s287_s30 = int_to_ptr.hbm [resolvable:$true] %s286_s30 }
   0x7   :  { %v234_v54 = vsel %vm111_vm6, 1.0, %v411_v52  ;;  %v260_v57 = vsel %vm238_vm8, %v233_v53, 0.0  ;;  %v235_v59 = vsel %vm112_vm7, 1.0, %v411_v52  ;;  %vm113_vm9 = vcmp.ne.s32.totalorder %v471_v12, 4294967295  ;;  %s284_s27 = sshll.u32 %s412_s1, 4  ;;  %s413_s4 = smov [#allocation4]   ;;  %s285_s27 = int_to_ptr.vmem [resolvable:$true] %s284_s27 }
   0x8   :  { %v261_v58 = vsel %vm238_vm8, %v234_v54, 0.0  ;;  %v236_v3 = vsel %vm113_vm9, 1.0, %v411_v52  ;;  %vm83_vm10 = vcmask 0   ;;  %s295_s5 = sshll.u32 %s413_s4, 4  ;;  %s297_s9 = sshll.u32 %s529_s3, 4  ;;  %s296_s5 = int_to_ptr.vmem [resolvable:$true] %s295_s5  ;;  %s298_s9 = int_to_ptr.hbm [resolvable:$true] %s297_s9 }
   0x9   :  { %84 = vst.msk [vmem:[#allocation2] sm:$0x1] %vm83_vm10, %v411_v52 }
   0xa   :  { %85 = vst.msk [vmem:[#allocation4] sm:$0x1] %vm83_vm10, %v411_v52 }
   0xb   :  { %131 = vmax.xlane.f32.xlu1 %v130_v8  ;;  %125 = vmax.xlane.f32.xlu0 %v124_v9 }
   0xc   :  { %161 = vperm.xlu2 %331, %v459_v10  }
  0x11   :  { %v259_v52 = vld [vmem:[#allocation4] sm:$0x1] }
  0x1f   :  { %164 = vperm.xlu0 %332, %v465_v11  }
  0x24   :  { %167 = vperm.xlu1 %333, %v471_v12  }
  0x5e   :  { %v159_v24 = vpop.permute.xlu2 %158 }
  0x5f   :  { %vm169_vm1 = vcmp.eq.s32.totalorder %v119_v22, %v159_v24 }
  0x66   :  { %v162_v32 = vpop.permute.xlu2 %161 }
  0x67   :  { %vm170_vm2 = vcmp.eq.s32.totalorder %v119_v22, %v162_v32 }
  0x76   :  { %v123_v13 = vpop.xlane.xlu0 %122  ;;  %v129_v14 = vpop.xlane.xlu1 %128 }
  0x77   :  { %v133_v15 = vsub.f32 %v86_v1, %v123_v13  ;;  %v135_v16 = vsub.f32 %v88_v0, %v129_v14  ;;  %v262_v0 = vadd.f32 %v261_v58, %v260_v57  ;;  %v263_v1 = vsel %vm238_vm8, %v235_v59, 0.0 }
  0x79   :  { %v137_v17 = vmul.f32 1.442695, %v133_v15  ;;  %v141_v18 = vmul.f32 1.442695, %v135_v16  ;;  %v173_v30 = vsel %vm169_vm1, %v133_v15, 0.0  ;;  %v264_v4 = vadd.f32 %v263_v1, %v262_v0 }
  0x7a   :  { %v177_v34 = vsel %vm120_vm0, %v173_v30, 0.0 }
  0x7b   :  { %334 = vpow2.f32 %v137_v17 }
  0x7c   :  { %336 = vpow2.f32 %v141_v18 }
  0x7e   :  { %v126_v20 = vpop.xlane.xlu0 %125  ;;  %v132_v29 = vpop.xlane.xlu1 %131 }
  0x7f   :  { %v134_v21 = vsub.f32 %v87_v7, %v126_v20  ;;  %v136_v33 = vsub.f32 %v89_v6, %v132_v29  ;;  %v265_v7 = vsel %vm238_vm8, %v236_v3, 0.0 }
  0x80   :  { %v266_v9 = vadd.f32 %v265_v7, %v264_v4 }
  0x81   :  { %v335_v23 = vpop.eup %334  ;;  %v139_v25 = vmul.f32 1.442695, %v134_v21  ;;  %v143_v36 = vmul.f32 1.442695, %v136_v33  ;;  %v174_v37 = vsel %vm170_vm2, %v134_v21, 0.0 }
  0x82   :  { %v337_v26 = vpop.eup %336  ;;  %v145_v27 = vsel %vm120_vm0, %v335_v23, 0.0  ;;  %v180_v38 = vsel %vm120_vm0, %v174_v37, 0.0 }
  0x83   :  { %338 = vpow2.f32 %v139_v25  ;;  %146 = vadd.xlane.f32.xlu2 %v145_v27  ;;  %v151_v28 = vsel %vm120_vm0, %v337_v26, 0.0 }
  0x84   :  { %152 = vadd.xlane.f32.xlu0 %v151_v28  ;;  %340 = vpow2.f32 %v143_v36 }
  0x89   :  { %v339_v31 = vpop.eup %338 }
  0x8a   :  { %v148_v35 = vsel %vm120_vm0, %v339_v31, 0.0  ;;  %v341_v40 = vpop.eup %340 }
  0x8b   :  { %178 = vadd.xlane.f32.xlu2 %v177_v34  ;;  %149 = vadd.xlane.f32.xlu1 %v148_v35  ;;  %v154_v44 = vsel %vm120_vm0, %v341_v40, 0.0 }
  0x91   :  { %v165_v42 = vpop.permute.xlu0 %164 }
  0x92   :  { %vm171_vm4 = vcmp.eq.s32.totalorder %v119_v22, %v165_v42 }
  0x93   :  { %181 = vadd.xlane.f32.xlu2 %v180_v38  ;;  %v175_v45 = vsel %vm171_vm4, %v135_v16, 0.0 }
  0x94   :  { %v183_v46 = vsel %vm120_vm0, %v175_v45, 0.0 }
  0x96   :  { %v168_v39 = vpop.permute.xlu1 %167 }
  0x97   :  { %vm172_vm3 = vcmp.eq.s32.totalorder %v119_v22, %v168_v39 }
  0x98   :  { %v176_v41 = vsel %vm172_vm3, %v136_v33, 0.0 }
  0x99   :  { %v186_v43 = vsel %vm120_vm0, %v176_v41, 0.0 }
  0x9a   :  { %187 = vadd.xlane.f32.xlu1 %v186_v43 }
  0x9b   :  { %155 = vadd.xlane.f32.xlu2 %v154_v44 }
  0xa2   :  { %267 = vadd.xlane.f32.xlu1 %v266_v9 }
  0xa3   :  { %184 = vadd.xlane.f32.xlu2 %v183_v46 }
  0xf6   :  { %v147_v47 = vpop.xlane.xlu2 %146 }
  0xf7   :  { %342 = vlog2.f32 %v147_v47  ;;  %v153_v6 = vpop.xlane.xlu0 %152 }
  0xfd   :  { %v343_v48 = vpop.eup %342 }
  0xfe   :  { %v190_v49 = vmul.f32 0.6931472, %v343_v48  ;;  %v179_v50 = vpop.xlane.xlu2 %178  ;;  %v150_v51 = vpop.xlane.xlu1 %149 }
  0xff   :  { %344 = vlog2.f32 %v150_v51 }
 0x100   :  { %v197_v55 = vsub.f32 %v190_v49, %v179_v50 }
 0x102   :  { %v201_v56 = vsub.f32 0.0, %v197_v55 }
 0x104   :  { %v205_v60 = vmul.f32 1.442695, %v201_v56 }
 0x105   :  { %v345_v61 = vpop.eup %344 }
 0x106   :  { %346 = vpow2.f32 %v205_v60  ;;  %v192_v62 = vmul.f32 0.6931472, %v345_v61  ;;  %v182_v63 = vpop.xlane.xlu2 %181 }
 0x107   :  { %348 = vlog2.f32 %v153_v6  ;;  %v237_v6 = vld [vmem:[#allocation2] sm:$0x1] }
 0x108   :  { %v198_v2 = vsub.f32 %v192_v62, %v182_v63 }
 0x10a   :  { %v202_v8 = vsub.f32 0.0, %v198_v2 }
 0x10c   :  { %v347_v13 = vpop.eup %346  ;;  %v207_v14 = vmul.f32 1.442695, %v202_v8 }
 0x10d   :  { %v213_v15 = vsub.f32 1.0, %v347_v13  ;;  %v349_v18 = vpop.eup %348  ;;  %v188_v28 = vpop.xlane.xlu1 %187 }
 0x10e   :  { %350 = vpow2.f32 %v207_v14  ;;  %v156_v16 = vpop.xlane.xlu2 %155  ;;  %v194_v22 = vmul.f32 0.6931472, %v349_v18 }
 0x10f   :  { %v217_v17 = vmax.f32 %v213_v15, 0.0  ;;  %352 = vlog2.f32 %v156_v16 }
 0x111   :  { %v221_v19 = vmul.f32 %v217_v17, %v217_v17 }
 0x113   :  { %v225_v26 = vmul.f32 %v221_v19, %v197_v55 }
 0x114   :  { %v351_v20 = vpop.eup %350 }
 0x115   :  { %v353_v21 = vpop.eup %352  ;;  %v214_v23 = vsub.f32 1.0, %v351_v20  ;;  %v229_v34 = vsel %vm110_vm5, %v225_v26, 0.0  ;;  %v268_v57 = vpop.xlane.xlu1 %267 }
 0x116   :  { %v196_v24 = vmul.f32 0.6931472, %v353_v21  ;;  %v185_v25 = vpop.xlane.xlu2 %184  ;;  %v239_v39 = vsel %vm238_vm8, %v229_v34, 0.0  ;;  %v269_v11 = vrot.slane %v268_v57, 4 }
 0x117   :  { %v218_v27 = vmax.f32 %v214_v23, 0.0  ;;  %v199_v29 = vsub.f32 %v194_v22, %v185_v25 }
 0x118   :  { %v200_v30 = vsub.f32 %v196_v24, %v188_v28  ;;  %v270_v58 = vadd.f32 %v269_v11, %v268_v57 }
 0x119   :  { %v222_v31 = vmul.f32 %v218_v27, %v218_v27  ;;  %v203_v32 = vsub.f32 0.0, %v199_v29 }
 0x11a   :  { %v204_v33 = vsub.f32 0.0, %v200_v30  ;;  %v271_v59 = vrot.slane %v270_v58, 2 }
 0x11b   :  { %v226_v35 = vmul.f32 %v222_v31, %v198_v2  ;;  %v209_v36 = vmul.f32 1.442695, %v203_v32 }
 0x11c   :  { %v211_v37 = vmul.f32 1.442695, %v204_v33  ;;  %v272_v62 = vadd.f32 %v271_v59, %v270_v58 }
 0x11d   :  { %v230_v38 = vsel %vm111_vm6, %v226_v35, 0.0  ;;  %354 = vpow2.f32 %v209_v36 }
 0x11e   :  { %v240_v40 = vsel %vm238_vm8, %v230_v38, 0.0  ;;  %356 = vpow2.f32 %v211_v37  ;;  %v273_v1 = vrot.slane %v272_v62, 1 }
 0x11f   :  { %v241_v41 = vadd.f32 %v240_v40, %v239_v39 }
 0x120   :  { %v274_v4 = vadd.f32 %v273_v1, %v272_v62 }
 0x123   :  { %v355_v42 = vpop.eup %354 }
 0x124   :  { %v357_v43 = vpop.eup %356  ;;  %v215_v44 = vsub.f32 1.0, %v355_v42 }
 0x125   :  { %v216_v45 = vsub.f32 1.0, %v357_v43 }
 0x126   :  { %v219_v46 = vmax.f32 %v215_v44, 0.0 }
 0x127   :  { %v220_v5 = vmax.f32 %v216_v45, 0.0 }
 0x128   :  { %v223_v47 = vmul.f32 %v219_v46, %v219_v46 }
 0x129   :  { %v224_v48 = vmul.f32 %v220_v5, %v220_v5 }
 0x12a   :  { %v227_v49 = vmul.f32 %v223_v47, %v199_v29 }
 0x12b   :  { %v228_v50 = vmul.f32 %v224_v48, %v200_v30 }
 0x12c   :  { %v231_v10 = vsel %vm112_vm7, %v227_v49, 0.0 }
 0x12d   :  { %v232_v51 = vsel %vm113_vm9, %v228_v50, 0.0  ;;  %v242_v53 = vsel %vm238_vm8, %v231_v10, 0.0 }
 0x12e   :  { %v243_v54 = vadd.f32 %v242_v53, %v241_v41  ;;  %v244_v55 = vsel %vm238_vm8, %v232_v51, 0.0 }
 0x130   :  { %v245_v56 = vadd.f32 %v244_v55, %v243_v54 }
 0x132   :  { %246 = vadd.xlane.f32.xlu2 %v245_v56 }
 0x1a5   :  { %v247_v12 = vpop.xlane.xlu2 %246 }
 0x1a6   :  { %v248_v60 = vrot.slane %v247_v12, 4 }
 0x1a8   :  { %v249_v61 = vadd.f32 %v248_v60, %v247_v12 }
 0x1aa   :  { %v250_v63 = vrot.slane %v249_v61, 2 }
 0x1ac   :  { %v251_v0 = vadd.f32 %v250_v63, %v249_v61 }
 0x1ae   :  { %v252_v2 = vrot.slane %v251_v0, 1 }
 0x1b0   :  { %v253_v3 = vadd.f32 %v252_v2, %v251_v0 }
 0x1b2   :  { %323 = vpush %v253_v3 }
 0x1b3   :  { %325 = vpush %v274_v4 }
 0x1e3   :  { %s324_s6 = spop %323 }
 0x1e4   :  { %v255_v7 = vstv %s324_s6  ;;  %s326_s10 = spop %325 }
 0x1e5   :  { %v256_v8 = vadd.f32 %v255_v7, %v237_v6  ;;  %v276_v9 = vstv %s326_s10 }
 0x1e6   :  { %v277_v13 = vadd.f32 %v276_v9, %v259_v52 }
 0x1e7   :  { %258 = vst.msk [vmem:[#allocation2] sm:$0x1] %vm83_vm10, %v256_v8 }
 0x1e8   :  { %278 = vst.msk [vmem:[#allocation4] sm:$0x1] %vm83_vm10, %v277_v13  ;;  %289 = dma.vmem_to_hbm [thread:$0]  %s285_s27, 16, %s287_s30, [#allocation3]  }
 0x1e9   :  { %300 = dma.vmem_to_hbm [thread:$0]  %s296_s5, 16, %s298_s9, [#allocation5]  }
 0x1ea   :  { %406 = dma.done.wait [#allocation3], 16  }
 0x1eb   :  { %407 = vsyncadd [#allocation3], 4294967280 }
 0x1ec   :  { %408 = dma.done.wait [#allocation5], 16  }
 0x1ed   :  { %409 = vsyncadd [#allocation5], 4294967280 }
 0x1ee   :  { %309 = vsyncpa [#allocation3], 1 }
 0x1ef   :  { %310 = vsyncpa [#allocation5], 1 }

</bundles_post_ra>
